<compile_context>
chip_gen: v7x
topology: tpu7x:2x2x1
jax: 0.10.0
libtpu: 0.0.40
codegen_flags: <defaults>
</compile_context>

<pallas_src>
import functools

import jax
import jax.numpy as jnp
from jax import lax
from jax.experimental import pallas as pl
from jax.experimental.pallas import tpu as pltpu


def _round_up(x, m):
    return (x + m - 1) // m * m


def _patch_embed_kernel(p_ref, w_ref, b_ref, o_ref):
    # p_ref: (tm, K) patch tile, w_ref: (K, tn) weight tile,
    # b_ref: (1, tn) f32 bias tile, o_ref: (tm, tn) output tile.
    acc = jnp.dot(p_ref[...], w_ref[...], preferred_element_type=jnp.float32)
    o_ref[...] = (acc + b_ref[...]).astype(o_ref.dtype)


def patch_embed_matmul(patches, w_t, bias_row, out_dtype, *,
                       tm=1024, tn=None, vmem_budget=28 * 1024 * 1024):
    """Tiled (M, K) @ (K, D) + bias -> (M, D).

    patches: (M, K) compute-dtype; w_t: (K, D) compute-dtype;
    bias_row: (1, D) float32.  Full K per block (no K-reduction axis).
    """
    M, K = patches.shape
    Kw, D = w_t.shape
    assert Kw == K

    bytes_in = jnp.dtype(patches.dtype).itemsize
    bytes_out = jnp.dtype(out_dtype).itemsize

    # Lane-dense output: pad D up to a multiple of 128 (also fixes D=32 toys).
    D_pad = max(128, _round_up(D, 128))

    # Keep the whole (K, D_pad) weight resident if it fits comfortably;
    # otherwise tile D (weight streamed, patch tile resident across D sweep).
    weight_bytes = K * D_pad * bytes_in
    if tn is None:
        tn = D_pad if weight_bytes <= vmem_budget // 2 else 256
    tn = min(tn, D_pad)
    if D_pad % tn != 0:
        tn = 128                       # D_pad is always a multiple of 128

    # Sublane-aligned rows: tm a multiple of 8 (or the full padded M).
    tm = min(tm, _round_up(M, 8))
    tm = max(8, _round_up(tm, 8))

    def _step_bytes(tm_):
        return (2 * tm_ * K * bytes_in        # patch tile, double-buffered
                + 2 * tm_ * tn * bytes_out    # output tile, double-buffered
                + 2 * K * tn * bytes_in       # weight tile(s)
                + 2 * tn * 4)                 # bias

    # Shrink tm until the per-step footprint fits the (v7x-safe) budget.
    while tm > 8 and _step_bytes(tm) > vmem_budget:
        tm = max(8, _round_up(tm // 2, 8))

    M_pad = _round_up(M, tm)
    if M_pad != M:
        patches = jnp.pad(patches, ((0, M_pad - M), (0, 0)))
    if D_pad != D:
        w_t = jnp.pad(w_t, ((0, 0), (0, D_pad - D)))
        bias_row = jnp.pad(bias_row, ((0, 0), (0, D_pad - D)))

    n_m = M_pad // tm
    n_d = D_pad // tn

    if n_d == 1:
        # Primary path: 1-D grid over M; full weight + bias stay VMEM-resident
        # (constant index_map -> no re-DMA); patches streamed exactly once.
        grid = (n_m,)
        in_specs = [
            pl.BlockSpec((tm, K), lambda i: (i, 0)),
            pl.BlockSpec((K, D_pad), lambda i: (0, 0)),
            pl.BlockSpec((1, D_pad), lambda i: (0, 0)),
        ]
        out_specs = pl.BlockSpec((tm, D_pad), lambda i: (i, 0))
        dims = ("parallel",)
    else:
        # Fallback: M OUTER / D inner so the (tm, K) patch tile stays resident
        # across the D sweep; only the (smaller) weight is re-streamed.
        # TODO(synk): add a K-reduction grid axis ("arbitrary") with a f32 VMEM
        # accumulator if K ever grows beyond a few thousand.
        grid = (n_m, n_d)
        in_specs = [
            pl.BlockSpec((tm, K), lambda i, j: (i, 0)),
            pl.BlockSpec((K, tn), lambda i, j: (0, j)),
            pl.BlockSpec((1, tn), lambda i, j: (0, j)),
        ]
        out_specs = pl.BlockSpec((tm, tn), lambda i, j: (i, j))
        dims = ("parallel", "parallel")

    # Explicit scoped-VMEM limit: per-step footprint + headroom (>= 16 MiB).
    vmem_limit = max(int(_step_bytes(tm) * 1.25) + (2 << 20), 16 << 20)

    out = pl.pallas_call(
        _patch_embed_kernel,
        out_shape=jax.ShapeDtypeStruct((M_pad, D_pad), out_dtype),
        grid_spec=pltpu.PrefetchScalarGridSpec(
            num_scalar_prefetch=0,
            grid=grid,
            in_specs=in_specs,
            out_specs=out_specs,
        ),
        compiler_params=pltpu.CompilerParams(
            dimension_semantics=dims,
            vmem_limit_bytes=vmem_limit,
        ),
    )(patches, w_t, bias_row)

    if M_pad != M or D_pad != D:
        out = out[:M, :D]
    return out


def patch_embed_forward(x, weight, bias, patch_size, tubelet_size,
                        compute_dtype=jnp.bfloat16, out_dtype=None,
                        tm=1024, tn=None):
    """x: (B, C, T, H, W); weight: (D, C, kt, ph, pw); bias: (D,) -> (B, N, D).

    out_dtype=None keeps the input dtype (matches the PyTorch module); pass
    out_dtype=compute_dtype to halve output HBM store traffic when the
    downstream consumer computes in bf16 anyway.
    """
    B, C, T, H, W = x.shape
    D = weight.shape[0]
    kt, ph, pw = tubelet_size, patch_size[0], patch_size[1]
    Tt, Hp, Wp = T // kt, H // ph, W // pw
    N = Tt * Hp * Wp
    K = C * kt * ph * pw
    if out_dtype is None:
        out_dtype = x.dtype

    # Glue: cast FIRST, then extract non-overlapping tubelet patches; K ordered
    # (C, kt, ph, pw) to match the Conv3d weight, N ordered (T', H', W') to
    # match .flatten(2).  Materialised once in the compute dtype.
    xp = x.astype(compute_dtype).reshape(B, C, Tt, kt, Hp, ph, Wp, pw)
    xp = xp.transpose(0, 2, 4, 6, 1, 3, 5, 7)      # (B, T', H', W', C, kt, ph, pw)
    patches = xp.reshape(B * N, K)

    # Weight as (K, D) compute-dtype; bias as (1, D) f32 (f32 epilogue add).
    w_t = weight.reshape(D, K).T.astype(compute_dtype)
    b = bias.reshape(1, D).astype(jnp.float32)

    out = patch_embed_matmul(patches, w_t, b, out_dtype, tm=tm, tn=tn)
    return out.reshape(B, N, D)


if __name__ == "__main__":
    # Small config consistent with the module's __init__.
    img_size = (16, 16)
    patch_size = (8, 8)
    in_chans = 4
    embed_dim = 32
    num_frames = 4
    tubelet_size = 2
    B = 2

    key = jax.random.PRNGKey(0)
    kx, kw, kb = jax.random.split(key, 3)

    x = jax.random.normal(
        kx, (B, in_chans, num_frames, img_size[0], img_size[1]), dtype=jnp.float32)
    # Conv3d weight: (embed_dim, in_chans, kt, ph, pw); deterministic init.
    weight = jax.random.normal(
        kw, (embed_dim, in_chans, tubelet_size, patch_size[0], patch_size[1]),
        dtype=jnp.float32) * 0.02
    bias = jax.random.normal(kb, (embed_dim,), dtype=jnp.float32) * 0.02

    fwd = jax.jit(functools.partial(
        patch_embed_forward, patch_size=patch_size, tubelet_size=tubelet_size))
    out = fwd(x, weight, bias)
    out = jax.block_until_ready(out)

    # Reference: lax 3-D convolution in f32 (NCTHW, stride == kernel).
    ref = lax.conv_general_dilated(
        x, weight,
        window_strides=(tubelet_size, patch_size[0], patch_size[1]),
        padding="VALID",
        dimension_numbers=("NCDHW", "OIDHW", "NCDHW"),
    ) + bias.reshape(1, embed_dim, 1, 1, 1)
    ref = ref.reshape(B, embed_dim, -1).transpose(0, 2, 1)   # (B, N, D)

    assert out.shape == ref.shape == (B, 8, embed_dim)
    # bf16 inputs / f32 accumulation vs f32 reference -> loose tolerance.
    assert jnp.allclose(out, ref, atol=5e-2, rtol=5e-2), float(
        jnp.max(jnp.abs(out - ref)))

    # Second run with a tiny tile to exercise the multi-step M pipeline.
    fwd_small = jax.jit(functools.partial(
        patch_embed_forward, patch_size=patch_size, tubelet_size=tubelet_size,
        tm=8))
    out2 = jax.block_until_ready(fwd_small(x, weight, bias))
    assert jnp.allclose(out2, ref, atol=5e-2, rtol=5e-2), float(
        jnp.max(jnp.abs(out2 - ref)))

    print("KERNEL_OK")
</pallas_src>

<mosaic_0001>
module attributes {stable_mosaic.version = 11 : i64} {
  func.func @_patch_embed_kernel(%arg0: i32, %arg1: memref<16x512xbf16, #tpu.memory_space<vmem>>, %arg2: memref<512x128xbf16, #tpu.memory_space<vmem>>, %arg3: memref<1x128xf32, #tpu.memory_space<vmem>>, %arg4: memref<16x128xf32, #tpu.memory_space<vmem>>) attributes {dimension_semantics = [#tpu.dimension_semantics<parallel>], iteration_bounds = array<i64: 1>, scalar_prefetch = 0 : i64, scratch_operands = 0 : i64, tpu.core_type = #tpu.core_type<tc>, window_params = [{transform_indices = @transform_0, window_bounds = array<i64: 16, 512>}, {pipeline_mode = #tpu.pipeline_mode<synchronous>, transform_indices = @transform_1, window_bounds = array<i64: 512, 128>}, {pipeline_mode = #tpu.pipeline_mode<synchronous>, transform_indices = @transform_2, window_bounds = array<i64: 1, 128>}, {transform_indices = @transform_3, window_bounds = array<i64: 16, 128>}]} {
    %c0 = arith.constant 0 : index
    %c0_0 = arith.constant 0 : index
    %0 = vector.load %arg1[%c0, %c0_0] : memref<16x512xbf16, #tpu.memory_space<vmem>>, vector<16x512xbf16>
    %c0_1 = arith.constant 0 : index
    %c0_2 = arith.constant 0 : index
    %1 = vector.load %arg2[%c0_1, %c0_2] : memref<512x128xbf16, #tpu.memory_space<vmem>>, vector<512x128xbf16>
    %cst = arith.constant dense<0.000000e+00> : vector<16x128xf32>
    %2 = tpu.matmul %0, %1, %cst {dimension_numbers = #tpu.dot_dimension_numbers<[1], [0], [0], [1], [0, 0, 1, 1], [], []>} : vector<16x512xbf16>, vector<512x128xbf16>, vector<16x128xf32> -> vector<16x128xf32>
    %c0_3 = arith.constant 0 : index
    %c0_4 = arith.constant 0 : index
    %3 = vector.load %arg3[%c0_3, %c0_4] : memref<1x128xf32, #tpu.memory_space<vmem>>, vector<1x128xf32>
    %4 = vector.broadcast %3 : vector<1x128xf32> to vector<16x128xf32>
    %5 = arith.addf %2, %4 : vector<16x128xf32>
    %c0_5 = arith.constant 0 : index
    %c0_6 = arith.constant 0 : index
    %6 = vector.load %arg4[%c0_5, %c0_6] : memref<16x128xf32, #tpu.memory_space<vmem>>, vector<16x128xf32>
    tpu.vector_store %arg4[%c0_5, %c0_6], %5 {strides = array<i32>} : memref<16x128xf32, #tpu.memory_space<vmem>>, vector<16x128xf32>,
    return
  }
  func.func @transform_0(%arg0: i32) -> (i32, i32) {
    %c0_i32 = arith.constant 0 : i32
    %c0_i32_0 = arith.constant 0 : i32
    return %arg0, %c0_i32 : i32, i32
  }
  func.func @transform_1(%arg0: i32) -> (i32, i32) {
    %c0_i32 = arith.constant 0 : i32
    %c0_i32_0 = arith.constant 0 : i32
    %c0_i32_1 = arith.constant 0 : i32
    return %c0_i32, %c0_i32_0 : i32, i32
  }
  func.func @transform_2(%arg0: i32) -> (i32, i32) {
    %c0_i32 = arith.constant 0 : i32
    %c0_i32_0 = arith.constant 0 : i32
    %c0_i32_1 = arith.constant 0 : i32
    return %c0_i32, %c0_i32_0 : i32, i32
  }
  func.func @transform_3(%arg0: i32) -> (i32, i32) {
    %c0_i32 = arith.constant 0 : i32
    %c0_i32_0 = arith.constant 0 : i32
    return %arg0, %c0_i32 : i32, i32
  }
}

</mosaic_0001>

<bundles_post_ra>
// kernel: patch_embed_forward.1
= control target key start
LH: loop header
LB: loop body
LE: loop exit
PB: predicated region body
PF: predicated region fallthrough
CT: control target
= control target key end

     0   :  { %s646_s1 = inlined_call_operand.vmem [shape: bf16[512,128], index: 1, kind: input, shape index: {}]   ;;  %s647_s0 = inlined_call_operand.vmem [shape: bf16[16,512], index: 0, kind: input, shape index: {}]   ;;  %s648_s2 = inlined_call_operand.vmem [shape: f32[1,128], index: 2, kind: input, shape index: {}]   ;;  %s649_s3 = inlined_call_operand.vmem [shape: f32[16,128], index: 3, kind: output, shape index: {}]  }
   0x1   :  { %v471_v0 = vld [vmem:[%s646_s1 + $0x40] sm:$0xff]   ;;  %v475_v4 = vld [vmem:[%s646_s1 + $0x48] sm:$0xff]   ;;  %v479_v8 = vld [vmem:[%s646_s1 + $0x50] sm:$0xff]  }
   0x2   :  { %v472_v1 = vld [vmem:[%s646_s1 + $0xc0] sm:$0xff]   ;;  %427 = vmatprep.subr.bf16.mxu0 %v471_v0  ;;  %v476_v5 = vld [vmem:[%s646_s1 + $0xc8] sm:$0xff]   ;;  %v480_v9 = vld [vmem:[%s646_s1 + $0xd0] sm:$0xff]  }
   0x3   :  { %v473_v2 = vld [vmem:[%s646_s1] sm:$0xff]   ;;  %449 = vmatprep.subr.bf16.mxu1 %v472_v1  ;;  %v477_v6 = vld [vmem:[%s646_s1 + $0x8] sm:$0xff]   ;;  %v481_v10 = vld [vmem:[%s646_s1 + $0x10] sm:$0xff]  }
   0x4   :  { %v474_v3 = vld [vmem:[%s646_s1 + $0x80] sm:$0xff]   ;;  %428 = vmatpush3.bf16.msra.mxu0 %v473_v2  ;;  %v478_v7 = vld [vmem:[%s646_s1 + $0x88] sm:$0xff]   ;;  %v482_v11 = vld [vmem:[%s646_s1 + $0x90] sm:$0xff]  }
   0x5   :  { %450 = vmatpush3.bf16.msra.mxu1 %v474_v3  ;;  %429 = vmatprep.subr.bf16.mxu0 %v475_v4  ;;  %v483_v12 = vld [vmem:[%s646_s1 + $0x58] sm:$0xff]   ;;  %v487_v16 = vld [vmem:[%s646_s1 + $0x60] sm:$0xff]   ;;  %v491_v20 = vld [vmem:[%s646_s1 + $0x68] sm:$0xff]  }
   0x6   :  { %451 = vmatprep.subr.bf16.mxu1 %v476_v5  ;;  %v484_v13 = vld [vmem:[%s646_s1 + $0xd8] sm:$0xff]   ;;  %v488_v17 = vld [vmem:[%s646_s1 + $0xe0] sm:$0xff]   ;;  %v492_v21 = vld [vmem:[%s646_s1 + $0xe8] sm:$0xff]  }
   0x7   :  { %v485_v14 = vld [vmem:[%s646_s1 + $0x18] sm:$0xff]   ;;  %v489_v18 = vld [vmem:[%s646_s1 + $0x20] sm:$0xff]   ;;  %v493_v22 = vld [vmem:[%s646_s1 + $0x28] sm:$0xff]  }
   0x8   :  { %430 = vmatpush3.bf16.msra.mxu0 %v477_v6  ;;  %v486_v15 = vld [vmem:[%s646_s1 + $0x98] sm:$0xff]   ;;  %v490_v19 = vld [vmem:[%s646_s1 + $0xa0] sm:$0xff]   ;;  %v494_v23 = vld [vmem:[%s646_s1 + $0xa8] sm:$0xff]  }
   0x9   :  { %452 = vmatpush3.bf16.msra.mxu1 %v478_v7  ;;  %431 = vmatprep.subr.bf16.mxu0 %v479_v8  ;;  %v495_v24 = vld [vmem:[%s646_s1 + $0x70] sm:$0xff]   ;;  %v499_v28 = vld [vmem:[%s646_s1 + $0x78] sm:$0xff]   ;;  %v390_v38 = vld [vmem:[%s648_s2] ss:$0 sm:$0xff] }
   0xa   :  { %453 = vmatprep.subr.bf16.mxu1 %v480_v9  ;;  %v496_v25 = vld [vmem:[%s646_s1 + $0xf0] sm:$0xff]   ;;  %v500_v29 = vld [vmem:[%s646_s1 + $0xf8] sm:$0xff]  }
   0xb   :  { %v497_v26 = vld [vmem:[%s646_s1 + $0x30] sm:$0xff]   ;;  %v501_v30 = vld [vmem:[%s646_s1 + $0x38] sm:$0xff]  }
   0xc   :  { %432 = vmatpush3.bf16.msra.mxu0 %v481_v10  ;;  %v498_v27 = vld [vmem:[%s646_s1 + $0xb0] sm:$0xff]   ;;  %v502_v31 = vld [vmem:[%s646_s1 + $0xb8] sm:$0xff]  }
   0xd   :  { %454 = vmatpush3.bf16.msra.mxu1 %v482_v11  ;;  %433 = vmatprep.subr.bf16.mxu0 %v483_v12  ;;  %v503_v32 = vld [vmem:[%s647_s0] ss:$16 sps:$4 sm:$0xff]   ;;  %v505_v33 = vld [vmem:[%s647_s0 + $0x4] ss:$16 sps:$4 sm:$0xff]   ;;  %v506_v34 = vld [vmem:[%s647_s0 + $0x8] ss:$16 sps:$4 sm:$0xff]  }
   0xe   :  { %455 = vmatprep.subr.bf16.mxu1 %v484_v13  ;;  %v508_v35 = vld [vmem:[%s647_s0 + $0xc] ss:$16 sps:$4 sm:$0xff]   ;;  %334 = vmatprep.mubr.bf16.mxu0 %v505_v33 }
   0xf   :  { %375 = vmatprep.mubr.bf16.mxu1 %v508_v35 }
  0x10   :  { %434 = vmatpush3.bf16.msra.mxu0 %v485_v14 }
  0x11   :  { %456 = vmatpush3.bf16.msra.mxu1 %v486_v15  ;;  %435 = vmatprep.subr.bf16.mxu0 %v487_v16 }
  0x12   :  { %457 = vmatprep.subr.bf16.mxu1 %v488_v17 }
  0x14   :  { %436 = vmatpush3.bf16.msra.mxu0 %v489_v18 }
  0x15   :  { %458 = vmatpush3.bf16.msra.mxu1 %v490_v19  ;;  %437 = vmatprep.subr.bf16.mxu0 %v491_v20 }
  0x16   :  { %459 = vmatprep.subr.bf16.mxu1 %v492_v21 }
  0x18   :  { %438 = vmatpush3.bf16.msra.mxu0 %v493_v22 }
  0x19   :  { %460 = vmatpush3.bf16.msra.mxu1 %v494_v23  ;;  %439 = vmatprep.subr.bf16.mxu0 %v495_v24 }
  0x1a   :  { %461 = vmatprep.subr.bf16.mxu1 %v496_v25 }
  0x1c   :  { %440 = vmatpush3.bf16.msra.mxu0 %v497_v26 }
  0x1d   :  { %462 = vmatpush3.bf16.msra.mxu1 %v498_v27  ;;  %441 = vmatprep.subr.bf16.mxu0 %v499_v28 }
  0x1e   :  { %463 = vmatprep.subr.bf16.mxu1 %v500_v29 }
  0x20   :  { %442 = vmatpush3.bf16.msra.mxu0 %v501_v30 }
  0x21   :  { %464 = vmatpush3.bf16.msra.mxu1 %v502_v31 }
  0x23   :  { %335 = vmatmul.mubr.bf16.vlgmr.msra.gmra.mrb[0].mxu0 %v503_v32 }
  0x24   :  { %376 = vmatmul.mubr.bf16.vlgmr.msra.gmra.mrb[0].mxu1 %v506_v34 }
  0xf6   :  { %v443_v36 = vpop.f32.mrb[0].mxu0 }
  0xf7   :  { %v465_v37 = vpop.f32.mrb[0].mxu1  ;;  %v444_v39 = vpop.f32.mrb[1].mxu0 }
  0xf8   :  { %v445_v40 = vadd.f32 %v444_v39, %v443_v36  ;;  %v466_v41 = vpop.f32.mrb[1].mxu1  ;;  %v446_v42 = vpop.f32.mrb[2].mxu0 }
  0xf9   :  { %v467_v43 = vadd.f32 %v466_v41, %v465_v37  ;;  %v468_v44 = vpop.f32.mrb[2].mxu1  ;;  %v447_v45 = vpop.f32.mrb[3].mxu0 }
  0xfa   :  { %v337_v46 = vadd.f32 %v445_v40, %v390_v38  ;;  %v448_v47 = vadd.f32 %v447_v45, %v446_v42  ;;  %v469_v48 = vpop.f32.mrb[3].mxu1 }
  0xfb   :  { %v470_v49 = vadd.f32 %v469_v48, %v468_v44 }
  0xfc   :  { %v378_v50 = vadd.f32 %v467_v43, %v337_v46  ;;  %v340_v51 = vadd.f32 %v448_v47, %v390_v38 }
  0xfe   :  { %384 = vst [vmem:[%s649_s3] sm:$0xff] %v378_v50  ;;  %v381_v52 = vadd.f32 %v470_v49, %v340_v51 }
 0x100   :  { %385 = vst [vmem:[%s649_s3 + $0x8] sm:$0xff] %v381_v52 }

</bundles_post_ra>
